<compile_context>
chip_gen: v5e
topology: v5e:2x2
jax: 0.10.0
libtpu: 0.0.40
codegen_flags: <defaults>
</compile_context>

<pallas_src>
import functools

import jax
import jax.numpy as jnp
from jax.experimental import pallas as pl
from jax.experimental.pallas import tpu as pltpu


def _triplet_loss_kernel(a_ref, p_ref, n_ref, o_ref, acc_ref, *,
                         tile_b, steps_per_split, nblocks, batch, needs_mask):
    s = pl.program_id(0)   # split (sharded across TensorCores when present)
    k = pl.program_id(1)   # reduction step within a split ("arbitrary")

    @pl.when(k == 0)
    def _init():
        acc_ref[...] = jnp.zeros_like(acc_ref)

    # Inputs stay in their HBM dtype; the f32 cast is VPU work hidden under DMA.
    a = a_ref[...].astype(jnp.float32)
    p = p_ref[...].astype(jnp.float32)
    n = n_ref[...].astype(jnp.float32)
    logical_block = s * steps_per_split + k   # UNCLAMPED block index (for mask)

    def _accumulate(mask_rows):
        da = a - p
        dn = a - n
        if mask_rows:
            # Zero rows beyond the true batch: covers the ragged tail block and
            # any phantom block created by rounding steps_per_split up.
            rows = jax.lax.broadcasted_iota(jnp.int32, a.shape, 0)
            valid = (rows + logical_block * tile_b) < batch
            da = jnp.where(valid, da, 0.0)
            dn = jnp.where(valid, dn, 0.0)
        # 1000*dp - 10*dn == 10 * (100*dp - dn); the 10x scale, margin and relu
        # are applied to the combined per-split partial sums in the wrapper.
        contrib = 100.0 * da * da - dn * dn
        # Sublane-fold each step's contribution into a tiny (1, D) accumulator.
        acc_ref[...] += jnp.sum(contrib, axis=0, keepdims=True)

    if needs_mask:
        is_tail = logical_block >= (nblocks - 1)

        @pl.when(jnp.logical_not(is_tail))
        def _steady():
            _accumulate(False)

        @pl.when(is_tail)
        def _tail():
            _accumulate(True)
    else:
        _accumulate(False)

    @pl.when(k == pl.num_programs(1) - 1)
    def _finalize():
        partial = jnp.sum(acc_ref[...])            # one cross-lane reduce/split
        o_ref[...] = jnp.full(o_ref.shape, partial, dtype=jnp.float32)


def _vmem_params():
    """Generation-aware (working-set budget, scoped vmem limit) in bytes."""
    cap = None
    try:
        cap = getattr(pltpu.get_tpu_info(), "vmem_capacity_bytes", None)
    except Exception:
        cap = None
    if not cap:
        cap = 64 * 1024 * 1024   # conservative default: v7x per-TC VMEM
    # Working set = 3 inputs x 2 pipeline buffers x tile (accumulator + output
    # are negligible).  ~48 MiB on 128 MiB chips (v5e/v6e), ~38 MiB on v7x.
    budget = min(int(cap * 0.6), 48 * 1024 * 1024)
    limit = int(min(budget + 12 * 1024 * 1024, cap - 4 * 1024 * 1024))
    return budget, limit


def _num_tensorcores():
    # v7x exposes 2 TensorCores per chip; v5e/v6e have 1.
    try:
        kind = jax.devices()[0].device_kind.lower()
    except Exception:
        kind = ""
    return 2 if "v7" in kind else 1


def _choose_tile_b(batch, feat, itemsize, budget_bytes):
    # Size the tile by bytes: 3 inputs x 2 pipeline buffers per row.
    bytes_per_row = 3 * 2 * feat * itemsize
    tb = budget_bytes // max(bytes_per_row, 1)
    align = 16 if itemsize == 2 else 8
    tb = max(align, (tb // align) * align)
    if tb >= batch:
        return batch                  # single full-extent block is always legal
    return tb


def triplet_loss(anchor, positive, negative, margin=1.0, tile_b=None):
    """Pallas TPU implementation of TripletLoss.forward. Returns a 0-d scalar."""
    assert anchor.shape == positive.shape == negative.shape
    assert anchor.dtype == positive.dtype == negative.dtype
    assert anchor.ndim == 2, "expected (B, D) inputs"
    B, D = anchor.shape
    itemsize = jnp.dtype(anchor.dtype).itemsize
    align = 16 if itemsize == 2 else 8

    budget, vmem_limit = _vmem_params()
    if tile_b is None:
        tile_b = _choose_tile_b(B, D, itemsize, budget)
    elif tile_b >= B:
        tile_b = B
    else:
        tile_b = max(align, (tile_b // align) * align)

    nblocks = pl.cdiv(B, tile_b)
    num_tc = _num_tensorcores()
    # Only split the batch when there are multiple TensorCores to run it on.
    nsplit = num_tc if (num_tc > 1 and nblocks >= num_tc) else 1
    spp = pl.cdiv(nblocks, nsplit)                 # reduction steps per split
    needs_mask = (nsplit * spp * tile_b != B)

    def in_map(s, k):
        # Clamp so a phantom trailing block re-reads valid data (masked to 0).
        return (jnp.minimum(s * spp + k, nblocks - 1), 0)

    kernel = functools.partial(
        _triplet_loss_kernel,
        tile_b=tile_b, steps_per_split=spp, nblocks=nblocks, batch=B,
        needs_mask=needs_mask)

    in_spec = pl.BlockSpec((tile_b, D), in_map)
    partials = pl.pallas_call(
        kernel,
        # One (8,128) output slab per split keeps the store lane-dense and
        # (8,128)-aligned; wrapper reads a single element per split.
        out_shape=jax.ShapeDtypeStruct((nsplit * 8, 128), jnp.float32),
        grid_spec=pltpu.PrefetchScalarGridSpec(
            num_scalar_prefetch=0,
            grid=(nsplit, spp),
            in_specs=[in_spec, in_spec, in_spec],
            out_specs=pl.BlockSpec((8, 128), lambda s, k: (s, 0)),
            scratch_shapes=[pltpu.VMEM((1, D), jnp.float32)],
        ),
        compiler_params=pltpu.CompilerParams(
            # TODO(synk): if an xprof trace on v7x shows one TensorCore idle,
            # switch the leading axis to pltpu.CORE_PARALLEL.
            dimension_semantics=(pltpu.PARALLEL, pltpu.ARBITRARY),
            vmem_limit_bytes=vmem_limit),
    )(anchor, positive, negative)

    per_split = partials.reshape(nsplit, 8, 128)[:, 0, 0]
    # losses.mean() of a 0-d tensor is the value itself.
    return jnp.maximum(10.0 * jnp.sum(per_split) + float(margin), 0.0)


if __name__ == "__main__":
    key = jax.random.PRNGKey(0)
    k_a, k_p, k_n = jax.random.split(key, 3)

    # Small embedding batch; B deliberately NOT a multiple of the 16-row tile
    # so the masked-tail (and, on v7x, phantom-block) path is exercised.
    B, D = 72, 256
    anchor = jax.random.normal(k_a, (B, D), dtype=jnp.float32)
    positive = jax.random.normal(k_p, (B, D), dtype=jnp.float32)
    negative = jax.random.normal(k_n, (B, D), dtype=jnp.float32)

    margin = 1.0
    # Reference in plain JAX (same math as the PyTorch module).
    dp = jnp.sum((anchor - positive) ** 2, axis=1) * 1000.0
    dn = jnp.sum((anchor - negative) ** 2, axis=1) * 10.0
    ref = jnp.maximum(jnp.sum(dp - dn) + margin, 0.0)

    # 1) Small explicit tile: multi-step reduction + predicated tail masking.
    loss_tiled = jax.block_until_ready(
        triplet_loss(anchor, positive, negative, margin=margin, tile_b=16))
    # 2) Auto byte-budget tile: single full-extent block, no masking.
    loss_auto = jax.block_until_ready(
        triplet_loss(anchor, positive, negative, margin=margin))

    assert jnp.allclose(loss_tiled, ref, rtol=1e-4, atol=1e-2), (loss_tiled, ref)
    assert jnp.allclose(loss_auto, ref, rtol=1e-4, atol=1e-2), (loss_auto, ref)

    print("KERNEL_OK")
</pallas_src>

<mosaic_0001>
module attributes {stable_mosaic.version = 11 : i64} {
  func.func @_triplet_loss_kernel(%arg0: i32, %arg1: i32, %arg2: memref<16x256xf32, #tpu.memory_space<vmem>>, %arg3: memref<16x256xf32, #tpu.memory_space<vmem>>, %arg4: memref<16x256xf32, #tpu.memory_space<vmem>>, %arg5: memref<8x128xf32, #tpu.memory_space<vmem>>, %arg6: memref<1x256xf32, #tpu.memory_space<vmem>>) attributes {dimension_semantics = [#tpu.dimension_semantics<parallel>, #tpu.dimension_semantics<arbitrary>], iteration_bounds = array<i64: 1, 5>, scalar_prefetch = 0 : i64, scratch_operands = 1 : i64, tpu.core_type = #tpu.core_type<tc>, window_params = [{transform_indices = @transform_0, window_bounds = array<i64: 16, 256>}, {transform_indices = @transform_1, window_bounds = array<i64: 16, 256>}, {transform_indices = @transform_2, window_bounds = array<i64: 16, 256>}, {transform_indices = @transform_3, window_bounds = array<i64: 8, 128>}]} {
    %c0_i32 = arith.constant 0 : i32
    %0 = arith.cmpi eq, %arg1, %c0_i32 : i32
    %1 = arith.extui %0 : i1 to i32
    %c0_i32_0 = arith.constant 0 : i32
    %2 = arith.cmpi ne, %1, %c0_i32_0 : i32
    scf.if %2 {
      %cst = arith.constant 0.000000e+00 : f32
      %17 = vector.broadcast %cst : f32 to vector<1x256xf32>
      %c0_10 = arith.constant 0 : index
      %c0_11 = arith.constant 0 : index
      %18 = vector.load %arg6[%c0_10, %c0_11] : memref<1x256xf32, #tpu.memory_space<vmem>>, vector<1x256xf32>
      tpu.vector_store %arg6[%c0_10, %c0_11], %17 {strides = array<i32>} : memref<1x256xf32, #tpu.memory_space<vmem>>, vector<1x256xf32>,
    } else {
    }
    %c0 = arith.constant 0 : index
    %c0_1 = arith.constant 0 : index
    %3 = vector.load %arg2[%c0, %c0_1] : memref<16x256xf32, #tpu.memory_space<vmem>>, vector<16x256xf32>
    %c0_2 = arith.constant 0 : index
    %c0_3 = arith.constant 0 : index
    %4 = vector.load %arg3[%c0_2, %c0_3] : memref<16x256xf32, #tpu.memory_space<vmem>>, vector<16x256xf32>
    %c0_4 = arith.constant 0 : index
    %c0_5 = arith.constant 0 : index
    %5 = vector.load %arg4[%c0_4, %c0_5] : memref<16x256xf32, #tpu.memory_space<vmem>>, vector<16x256xf32>
    %c5_i32 = arith.constant 5 : i32
    %6 = arith.muli %arg0, %c5_i32 : i32
    %7 = arith.addi %6, %arg1 : i32
    %c4_i32 = arith.constant 4 : i32
    %8 = arith.cmpi sge, %7, %c4_i32 : i32
    %true = arith.constant true
    %9 = arith.xori %8, %true : i1
    %10 = arith.extui %9 : i1 to i32
    %c0_i32_6 = arith.constant 0 : i32
    %11 = arith.cmpi ne, %10, %c0_i32_6 : i32
    scf.if %11 {
      %17 = arith.subf %3, %4 : vector<16x256xf32>
      %18 = arith.subf %3, %5 : vector<16x256xf32>
      %cst = arith.constant 1.000000e+02 : f32
      %19 = vector.broadcast %cst : f32 to vector<16x256xf32>
      %20 = arith.mulf %19, %17 : vector<16x256xf32>
      %21 = arith.mulf %20, %17 : vector<16x256xf32>
      %22 = arith.mulf %18, %18 : vector<16x256xf32>
      %23 = arith.subf %21, %22 : vector<16x256xf32>
      %c0_10 = arith.constant 0 : index
      %c0_11 = arith.constant 0 : index
      %24 = vector.load %arg6[%c0_10, %c0_11] : memref<1x256xf32, #tpu.memory_space<vmem>>, vector<1x256xf32>
      %cst_12 = arith.constant dense<0.000000e+00> : vector<256xf32>
      %25 = vector.multi_reduction <add>, %23, %cst_12 [0] : vector<16x256xf32> to vector<256xf32>
      %26 = vector.shape_cast %25 : vector<256xf32> to vector<1x256xf32>
      %27 = arith.addf %24, %26 : vector<1x256xf32>
      %c0_13 = arith.constant 0 : index
      %c0_14 = arith.constant 0 : index
      %28 = vector.load %arg6[%c0_13, %c0_14] : memref<1x256xf32, #tpu.memory_space<vmem>>, vector<1x256xf32>
      tpu.vector_store %arg6[%c0_13, %c0_14], %27 {strides = array<i32>} : memref<1x256xf32, #tpu.memory_space<vmem>>, vector<1x256xf32>,
    } else {
    }
    %12 = arith.extui %8 : i1 to i32
    %c0_i32_7 = arith.constant 0 : i32
    %13 = arith.cmpi ne, %12, %c0_i32_7 : i32
    scf.if %13 {
      %17 = arith.subf %3, %4 : vector<16x256xf32>
      %18 = arith.subf %3, %5 : vector<16x256xf32>
      %19 = tpu.iota {dimensions = array<i32: 0>} : vector<16x256xi32>
      %c16_i32 = arith.constant 16 : i32
      %20 = arith.muli %7, %c16_i32 : i32
      %21 = vector.broadcast %20 : i32 to vector<16x256xi32>
      %22 = arith.addi %19, %21 : vector<16x256xi32>
      %c72_i32 = arith.constant 72 : i32
      %23 = vector.broadcast %c72_i32 : i32 to vector<16x256xi32>
      %24 = arith.cmpi slt, %22, %23 : vector<16x256xi32>
      %cst = arith.constant 0.000000e+00 : f32
      %25 = vector.broadcast %cst : f32 to vector<16x256xf32>
      %26 = arith.select %24, %17, %25 : vector<16x256xi1>, vector<16x256xf32>
      %cst_10 = arith.constant 0.000000e+00 : f32
      %27 = vector.broadcast %cst_10 : f32 to vector<16x256xf32>
      %28 = arith.select %24, %18, %27 : vector<16x256xi1>, vector<16x256xf32>
      %cst_11 = arith.constant 1.000000e+02 : f32
      %29 = vector.broadcast %cst_11 : f32 to vector<16x256xf32>
      %30 = arith.mulf %29, %26 : vector<16x256xf32>
      %31 = arith.mulf %30, %26 : vector<16x256xf32>
      %32 = arith.mulf %28, %28 : vector<16x256xf32>
      %33 = arith.subf %31, %32 : vector<16x256xf32>
      %c0_12 = arith.constant 0 : index
      %c0_13 = arith.constant 0 : index
      %34 = vector.load %arg6[%c0_12, %c0_13] : memref<1x256xf32, #tpu.memory_space<vmem>>, vector<1x256xf32>
      %cst_14 = arith.constant dense<0.000000e+00> : vector<256xf32>
      %35 = vector.multi_reduction <add>, %33, %cst_14 [0] : vector<16x256xf32> to vector<256xf32>
      %36 = vector.shape_cast %35 : vector<256xf32> to vector<1x256xf32>
      %37 = arith.addf %34, %36 : vector<1x256xf32>
      %c0_15 = arith.constant 0 : index
      %c0_16 = arith.constant 0 : index
      %38 = vector.load %arg6[%c0_15, %c0_16] : memref<1x256xf32, #tpu.memory_space<vmem>>, vector<1x256xf32>
      tpu.vector_store %arg6[%c0_15, %c0_16], %37 {strides = array<i32>} : memref<1x256xf32, #tpu.memory_space<vmem>>, vector<1x256xf32>,
    } else {
    }
    %c4_i32_8 = arith.constant 4 : i32
    %14 = arith.cmpi eq, %arg1, %c4_i32_8 : i32
    %15 = arith.extui %14 : i1 to i32
    %c0_i32_9 = arith.constant 0 : i32
    %16 = arith.cmpi ne, %15, %c0_i32_9 : i32
    scf.if %16 {
      %c0_10 = arith.constant 0 : index
      %c0_11 = arith.constant 0 : index
      %17 = vector.load %arg6[%c0_10, %c0_11] : memref<1x256xf32, #tpu.memory_space<vmem>>, vector<1x256xf32>
      %18 = vector.shape_cast %17 : vector<1x256xf32> to vector<1x1x256xf32>
      %cst = arith.constant dense<0.000000e+00> : vector<1xf32>
      %19 = vector.multi_reduction <add>, %18, %cst [1, 2] : vector<1x1x256xf32> to vector<1xf32>
      %20 = vector.shape_cast %19 : vector<1xf32> to vector<1x1x1xf32>
      %21 = vector.extract %20[0, 0, 0] : f32 from vector<1x1x1xf32>
      %22 = vector.broadcast %21 : f32 to vector<8x128xf32>
      %c0_12 = arith.constant 0 : index
      %c0_13 = arith.constant 0 : index
      %23 = vector.load %arg5[%c0_12, %c0_13] : memref<8x128xf32, #tpu.memory_space<vmem>>, vector<8x128xf32>
      tpu.vector_store %arg5[%c0_12, %c0_13], %22 {strides = array<i32>} : memref<8x128xf32, #tpu.memory_space<vmem>>, vector<8x128xf32>,
    } else {
    }
    return
  }
  func.func @transform_0(%arg0: i32, %arg1: i32) -> (i32, i32) {
    %c5_i32 = arith.constant 5 : i32
    %0 = arith.muli %arg0, %c5_i32 : i32
    %1 = arith.addi %0, %arg1 : i32
    %c4_i32 = arith.constant 4 : i32
    %2 = arith.minsi %1, %c4_i32 : i32
    %c0_i32 = arith.constant 0 : i32
    %c0_i32_0 = arith.constant 0 : i32
    return %2, %c0_i32 : i32, i32
  }
  func.func @transform_1(%arg0: i32, %arg1: i32) -> (i32, i32) {
    %c5_i32 = arith.constant 5 : i32
    %0 = arith.muli %arg0, %c5_i32 : i32
    %1 = arith.addi %0, %arg1 : i32
    %c4_i32 = arith.constant 4 : i32
    %2 = arith.minsi %1, %c4_i32 : i32
    %c0_i32 = arith.constant 0 : i32
    %c0_i32_0 = arith.constant 0 : i32
    return %2, %c0_i32 : i32, i32
  }
  func.func @transform_2(%arg0: i32, %arg1: i32) -> (i32, i32) {
    %c5_i32 = arith.constant 5 : i32
    %0 = arith.muli %arg0, %c5_i32 : i32
    %1 = arith.addi %0, %arg1 : i32
    %c4_i32 = arith.constant 4 : i32
    %2 = arith.minsi %1, %c4_i32 : i32
    %c0_i32 = arith.constant 0 : i32
    %c0_i32_0 = arith.constant 0 : i32
    return %2, %c0_i32 : i32, i32
  }
  func.func @transform_3(%arg0: i32, %arg1: i32) -> (i32, i32) {
    %c0_i32 = arith.constant 0 : i32
    %c0_i32_0 = arith.constant 0 : i32
    return %arg0, %c0_i32 : i32, i32
  }
}

</mosaic_0001>

<bundles_post_ra>
// kernel: tpu_custom_call.1
= control target key start
LH: loop header
LB: loop body
LE: loop exit
PB: predicated region body
PF: predicated region fallthrough
CT: control target
= control target key end

     0   :  { %8 = vsyncpa [#allocation4], 0  ;;  %s1303_s0 = inlined_call_operand.hbm [shape: f32[72,256], index: 0, kind: input, shape index: {}]   ;;  %s1304_s1 = inlined_call_operand.hbm [shape: f32[72,256], index: 1, kind: input, shape index: {}]   ;;  %s1305_s2 = inlined_call_operand.hbm [shape: f32[72,256], index: 2, kind: input, shape index: {}]   ;;  %s1306_s3 = inlined_call_operand.hbm [shape: f32[8,128], index: 3, kind: output, shape index: {}]  }
   0x1   :  { %10 = vsyncpa [#allocation4 + $0x1], 0 }
   0x2   :  { %11 = vsyncpa [#allocation7], 0 }
   0x3   :  { %13 = vsyncpa [#allocation7 + $0x1], 0 }
   0x4   :  { %14 = vsyncpa [#allocation5], 0  ;;  %s1015_s12 = smov 0   ;;  %s1017_s13 = smov 0  }
   0x5   :  { %s1019_s14 = smov 0   ;;  %s1021_s15 = smov 0  }
   0x6   :  { %s1023_s16 = smov 0   ;;  %s1025_s17 = smov 0  }
   0x7 LB: > { %s29_s18 = sadd.s32 1, %s978_s16  ;;  %p38_p1 = scmp.lt.s32.totalorder %s978_s16, 4  ;;  %s982_s17 = sphi %s1025_s17, %s20_s17   ;;  %s978_s16 = sphi %s1023_s16, %s1316_s16   ;;  %s974_s15 = sphi %s1021_s15, %s1315_s15   ;;  %s970_s14 = sphi %s1019_s14, %s1314_s14   ;;  %s966_s13 = sphi %s1017_s13, %s1313_s13   ;;  %s962_s12 = sphi %s1015_s12, %s1312_s12  }
   0x8   : > { %p30_p0 = scmp.ge.s32.totalorder %s29_s18, 5  ;;  %s1046_s19 = sadd.s32 4294967295, %s982_s17  }
   0x9   : > { %p54_p2 = scmp.ne.s32.totalorder %s970_s14, %s966_s13  ;;  %p55_p4 = scmp.eq.s32.totalorder %s982_s17, 0 }
   0xa   : > { %s1318_s18 = smov (%p30_p0, %s29_s18), 0  ;;  %p60_p5 = scmp.ne.s32.totalorder %s966_s13, %s962_s12 }
   0xb   : > { %s1053_s20 = scalar_select %p38_p1, %s978_s16, 4 }
   0xc   : > { %p42_p3 = scmp.lt.s32.totalorder %s1318_s18, 4  ;;  %p61_p6 = scmp.eq.s32.totalorder %s1046_s19, 0 }
   0xd   : > { %p1060_p7 = por %p55_p4, %p54_p2  ;;  %s47_s25 = sadd.s32 1, %s970_s14 }
   0xe   : > { %s43_s21 = scalar_select %p42_p3, %s1318_s18, 4 }
   0xf   : > { %p1064_p8 = por %p61_p6, %p60_p5  ;;  %p662_p10 = scmp.ge.s32.totalorder %s982_s17, 5 }
  0x10   : > { %s44_s24 = ssub.s32 %s1053_s20, %s43_s21 }
  0x11   : > { %p45_p9 = scmp.eq.s32.totalorder %s44_s24, 0  ;;  %174 = sbr.rel (%p662_p10) target bundleno = 130 (0x82), region = 16 }
  0x13   : > { %s1071_s26 = scalar_select %p45_p9, %s970_s14, %s47_s25  }
  0x16   : > { %177 = sbr.rel (!%p1060_p7) target bundleno = 58 (0x3a), region = 20  ;;  %s178_s27 = sand.u32 (%p1060_p7), 1, %s970_s14  }
  0x17   : > { %s664_s28 = sshll.u32 (%p1060_p7), %s1053_s20, 1  ;;  %s663_s29 = sshll.u32 (%p1060_p7), %s178_s27, 5 }
  0x18   : > { %s188_s30 = ssub.s32 (%p1060_p7), 9, %s664_s28  ;;  %s1081_s7 = scalar_lea.sflag (%p1060_p7), [#allocation4], %s178_s27 }
  0x19   : > { %p189_p11 = scmp.lt.s32.totalorder (%p1060_p7), %s188_s30, 2  ;;  %s182_s8 = scalar_lea.vmem (%p1060_p7), [#allocation3], %s663_s29 }
  0x1b   : > { %s1320_s30 = smov (!%p189_p11, %s188_s30), 2 }
  0x1c   : > { %s703_s4 = sshll.u32 %s1320_s30, 4 }
  0x1d   : > { %s193_s5 = ssub.s32 32, %s703_s4 }
  0x1e   : > { %s194_s6 = sshll.u32 %s193_s5, 4 }
  0x1f   : > { %195 = vsyncadd %s1081_s7, %s194_s6  ;;  %p1084_p12 = scmp.ne.s32.totalorder %s703_s4, 0  ;;  %s705_s10 = sshll.u32 %s1053_s20, 5 }
  0x20   : > { %s199_s21 = scalar_lea.hbm %s1303_s0, %s705_s10  ;;  %s1092_s24 = sshll.u32 %s182_s8, 4  ;;  %s204_s24 = int_to_ptr.vmem [resolvable:$true] %s1092_s24 }
  0x21   : > { %s201_s25 = sshll.u32 %s199_s21, 4  ;;  %s671_s27 = sshll.u32 %s1320_s30, 8  ;;  %s1095_s25 = int_to_ptr.hbm [resolvable:$true] %s201_s25 }
  0x22   : > { %s779_s28 = sshra.s32 %s1095_s25, 4  ;;  %s781_s29 = sshrl.u32 %s671_s27, 4  ;;  %s780_s28 = int_to_ptr.hbm [resolvable:$true] %s779_s28 }
  0x23   : > { %s786_s4 = scalar_lea.hbm %s780_s28, %s781_s29  ;;  %s790_s8 = scalar_lea.hbm %s1303_s0, 144 }
  0x24   : > { %p787_p13 = scmp.ne.s32.totalorder %s780_s28, %s786_s4  ;;  %p792_p2 = scmp.lt.s32.totalorder %s790_s8, %s786_s4 }
  0x26   : > { %p788_p0 = pnand %p787_p13, %p1084_p12 }
  0x28   : > { %p789_p1 = pneg %p788_p0 }
  0x2a   : > { %p794_p3 = pnand %p792_p2, %p789_p1 }
  0x2c   : > { %797 = shalt.err (!%p794_p3)
}
  0x2d   : > { %s798_s10 = sshra.s32 %s204_s24, 4  ;;  %s984_s12 = smov [#allocation3]   ;;  %s799_s10 = int_to_ptr.vmem [resolvable:$true] %s798_s10 }
  0x2e   : > { %s805_s11 = scalar_lea.vmem %s799_s10, %s781_s29  ;;  %s809_s21 = scalar_lea.vmem %s984_s12, 64 }
  0x2f   : > { %p806_p4 = scmp.ne.s32.totalorder %s799_s10, %s805_s11  ;;  %p811_p9 = scmp.lt.s32.totalorder %s809_s21, %s805_s11 }
  0x31   : > { %p807_p5 = pnand %p806_p4, %p1084_p12 }
  0x33   : > { %p808_p6 = pneg %p807_p5 }
  0x35   : > { %p813_p10 = pnand %p811_p9, %p808_p6 }
  0x37   : > { %816 = shalt.err (!%p813_p10)
}
  0x38   : > { %s985_s28 = smov 256   ;;  %s986_s4 = smov 16  }
  0x39   : > { %209 = dma.hbm_to_vmem [thread:$0]  (%p1084_p12), %s1095_s25, %s671_s27, %s204_s24, %s1081_s7, %s985_s28, %s985_s28, %s986_s4  }
  0x3a PF: > { %212 = sbr.rel (!%p1060_p7) target bundleno = 94 (0x5e), region = 24  ;;  %s213_s29 = sand.u32 (%p1060_p7), 1, %s982_s17  }
  0x3b   : > { %s215_s5 = sand.u32 (%p1060_p7), 1, %s970_s14   ;;  %s673_s8 = sshll.u32 (%p1060_p7), %s1053_s20, 1 }
  0x3c   : > { %s672_s6 = sshll.u32 (%p1060_p7), %s215_s5, 5  ;;  %s223_s10 = ssub.s32 (%p1060_p7), 9, %s673_s8 }
  0x3d   : > { %p224_p11 = scmp.lt.s32.totalorder (%p1060_p7), %s223_s10, 2  ;;  %s1126_s7 = scalar_lea.sflag (%p1060_p7), [#allocation7], %s213_s29 }
  0x3e   : > { %s217_s24 = scalar_lea.vmem (%p1060_p7), [#allocation6], %s672_s6 }
  0x3f   : > { %s1322_s10 = smov (!%p224_p11, %s223_s10), 2 }
  0x40   : > { %s706_s9 = sshll.u32 %s1322_s10, 4 }
  0x41   : > { %s228_s11 = ssub.s32 32, %s706_s9 }
  0x42   : > { %s229_s30 = sshll.u32 %s228_s11, 4 }
  0x43   : > { %230 = vsyncadd %s1126_s7, %s229_s30  ;;  %p1129_p12 = scmp.ne.s32.totalorder %s706_s9, 0  ;;  %s708_s27 = sshll.u32 %s1053_s20, 5 }
  0x44   : > { %s234_s28 = scalar_lea.hbm %s1304_s1, %s708_s27  ;;  %s1137_s4 = sshll.u32 %s217_s24, 4  ;;  %s239_s4 = int_to_ptr.vmem [resolvable:$true] %s1137_s4 }
  0x45   : > { %s236_s29 = sshll.u32 %s234_s28, 4  ;;  %s680_s5 = sshll.u32 %s1322_s10, 8  ;;  %s1140_s29 = int_to_ptr.hbm [resolvable:$true] %s236_s29 }
  0x46   : > { %s818_s6 = sshra.s32 %s1140_s29, 4  ;;  %s820_s8 = sshrl.u32 %s680_s5, 4  ;;  %s819_s6 = int_to_ptr.hbm [resolvable:$true] %s818_s6 }
  0x47   : > { %s825_s9 = scalar_lea.hbm %s819_s6, %s820_s8  ;;  %s829_s24 = scalar_lea.hbm %s1304_s1, 144 }
  0x48   : > { %p826_p13 = scmp.ne.s32.totalorder %s819_s6, %s825_s9  ;;  %p831_p2 = scmp.lt.s32.totalorder %s829_s24, %s825_s9 }
  0x4a   : > { %p827_p0 = pnand %p826_p13, %p1129_p12 }
  0x4c   : > { %p828_p1 = pneg %p827_p0 }
  0x4e   : > { %p833_p3 = pnand %p831_p2, %p828_p1 }
  0x50   : > { %836 = shalt.err (!%p833_p3)
}
  0x51   : > { %s837_s27 = sshra.s32 %s239_s4, 4  ;;  %s987_s21 = smov [#allocation6]   ;;  %s838_s27 = int_to_ptr.vmem [resolvable:$true] %s837_s27 }
  0x52   : > { %s844_s12 = scalar_lea.vmem %s838_s27, %s820_s8  ;;  %s848_s28 = scalar_lea.vmem %s987_s21, 64 }
  0x53   : > { %p845_p4 = scmp.ne.s32.totalorder %s838_s27, %s844_s12  ;;  %p850_p9 = scmp.lt.s32.totalorder %s848_s28, %s844_s12 }
  0x55   : > { %p846_p5 = pnand %p845_p4, %p1129_p12 }
  0x57   : > { %p847_p6 = pneg %p846_p5 }
  0x59   : > { %p852_p10 = pnand %p850_p9, %p847_p6 }
  0x5b   : > { %855 = shalt.err (!%p852_p10)
}
  0x5c   : > { %s988_s6 = smov 256   ;;  %s989_s9 = smov 16  }
  0x5d   : > { %244 = dma.hbm_to_vmem [thread:$0]  (%p1129_p12), %s1140_s29, %s680_s5, %s239_s4, %s1126_s7, %s988_s6, %s988_s6, %s989_s9  }
  0x5e PF: > { %247 = sbr.rel (!%p1060_p7) target bundleno = 130 (0x82), region = 28  ;;  %s248_s8 = sand.u32 (%p1060_p7), 1, %s982_s17  }
  0x5f   : > { %s250_s11 = sand.u32 (%p1060_p7), 1, %s970_s14   ;;  %s682_s24 = sshll.u32 (%p1060_p7), %s1053_s20, 1 }
  0x60   : > { %s681_s30 = sshll.u32 (%p1060_p7), %s250_s11, 5  ;;  %s258_s27 = ssub.s32 (%p1060_p7), 9, %s682_s24 }
  0x61   : > { %p259_p11 = scmp.lt.s32.totalorder (%p1060_p7), %s258_s27, 2  ;;  %s1171_s7 = scalar_lea.sflag (%p1060_p7), [#allocation7], %s248_s8 }
  0x62   : > { %s252_s22 = scalar_lea.vmem (%p1060_p7), [#allocation8], %s681_s30 }
  0x63   : > { %s1324_s27 = smov (!%p259_p11, %s258_s27), 2 }
  0x64   : > { %s709_s25 = sshll.u32 %s1324_s27, 4 }
  0x65   : > { %s263_s12 = ssub.s32 32, %s709_s25 }
  0x66   : > { %s264_s10 = sshll.u32 %s263_s12, 4 }
  0x67   : > { %265 = vsyncadd %s1171_s7, %s264_s10  ;;  %p1174_p7 = scmp.ne.s32.totalorder %s709_s25, 0  ;;  %s711_s29 = sshll.u32 %s1053_s20, 5 }
  0x68   : > { %s269_s28 = scalar_lea.hbm %s1305_s2, %s711_s29  ;;  %s1182_s6 = sshll.u32 %s252_s22, 4  ;;  %s274_s6 = int_to_ptr.vmem [resolvable:$true] %s1182_s6 }
  0x69   : > { %s271_s9 = sshll.u32 %s269_s28, 4  ;;  %s689_s8 = sshll.u32 %s1324_s27, 8  ;;  %s1185_s9 = int_to_ptr.hbm [resolvable:$true] %s271_s9 }
  0x6a   : > { %s857_s11 = sshra.s32 %s1185_s9, 4  ;;  %s859_s30 = sshrl.u32 %s689_s8, 4  ;;  %s858_s11 = int_to_ptr.hbm [resolvable:$true] %s857_s11 }
  0x6b   : > { %s864_s24 = scalar_lea.hbm %s858_s11, %s859_s30  ;;  %s868_s12 = scalar_lea.hbm %s1305_s2, 144 }
  0x6c   : > { %p865_p12 = scmp.ne.s32.totalorder %s858_s11, %s864_s24  ;;  %p870_p1 = scmp.lt.s32.totalorder %s868_s12, %s864_s24 }
  0x6e   : > { %p866_p13 = pnand %p865_p12, %p1174_p7 }
  0x70   : > { %p867_p0 = pneg %p866_p13 }
  0x72   : > { %p872_p2 = pnand %p870_p1, %p867_p0 }
  0x74   : > { %875 = shalt.err (!%p872_p2)
}
  0x75   : > { %s876_s10 = sshra.s32 %s274_s6, 4  ;;  %s990_s29 = smov [#allocation8]   ;;  %s877_s10 = int_to_ptr.vmem [resolvable:$true] %s876_s10 }
  0x76   : > { %s883_s22 = scalar_lea.vmem %s877_s10, %s859_s30  ;;  %s887_s5 = scalar_lea.vmem %s990_s29, 64 }
  0x77   : > { %p884_p3 = scmp.ne.s32.totalorder %s877_s10, %s883_s22  ;;  %p889_p6 = scmp.lt.s32.totalorder %s887_s5, %s883_s22 }
  0x79   : > { %p885_p4 = pnand %p884_p3, %p1174_p7 }
  0x7b   : > { %p886_p5 = pneg %p885_p4 }
  0x7d   : > { %p891_p9 = pnand %p889_p6, %p886_p5 }
  0x7f   : > { %894 = shalt.err (!%p891_p9)
}
  0x80   : > { %s991_s21 = smov 256   ;;  %s992_s28 = smov 16  }
  0x81   : > { %279 = dma.hbm_to_vmem [thread:$0]  (%p1174_p7), %s1185_s9, %s689_s8, %s274_s6, %s1171_s7, %s991_s21, %s991_s21, %s992_s28  }
  0x82 PF: > { %p690_p10 = scmp.ge.s32.totalorder %s982_s17, 1  ;;  %p281_p11 = scmp.lt.s32.totalorder %s982_s17, 6 }
  0x84   : > { %p282_p12 = pnand %p690_p10, %p281_p11 }
  0x85   : > { %s287_s11 = sand.u32 (!%p282_p12), 1, %s966_s13  }
  0x86   : > { %285 = sbr.rel (%p282_p12) target bundleno = 431 (0x1af), region = 32  ;;  %s691_s30 = sshll.u32 (!%p282_p12), %s287_s11, 5 }
  0x87   : > { %s288_s24 = scalar_lea.sflag (!%p282_p12), [#allocation4], %s287_s11  ;;  %s291_s20 = scalar_lea.vmem (!%p282_p12), [#allocation3], %s691_s30 }
  0x8b   : > { %949 = dma.done.wait (%p1064_p8), %s288_s24, 512  }
  0x8c   : > { %951 = vsyncadd (%p1064_p8), %s288_s24, 4294966784  ;;  %s297_s27 = sand.u32 1, %s1046_s19   ;;  %s301_s4 = scalar_lea.vmem [#allocation6], %s691_s30 }
  0x8d   : > { %s298_s7 = scalar_lea.sflag [#allocation7], %s297_s27 }
  0x8e   : > { %953 = dma.done.wait (%p1064_p8), %s298_s7, 1024  }
  0x8f   : > { %955 = vsyncadd (%p1064_p8), %s298_s7, 4294966272  ;;  %s311_s6 = scalar_lea.vmem [#allocation8], %s691_s30  ;;  %p694_p7 = scmp.ne.s32.totalorder %s974_s15, 0 }
  0x91   : > { %373 = sbr.rel (%p694_p7) target bundleno = 154 (0x9a), region = 48 }
  0x96   : > { %v374_v0 = vlaneseq  ;;  %v993_v1 = vmov 0.0  }
  0x98   : > { %vm376_vm0 = vcmp.lt.s32.totalorder %v374_v0, 256 }
  0x99   : > { %378 = vst.msk [vmem:[#allocation2] sm:$0x3] %vm376_vm0, %v993_v1 }
  0x9a PF: > { %v1221_v2 = vld [vmem:[%s291_s20] sm:$0xff]  ;;  %v1223_v3 = vld [vmem:[%s291_s20 + $0x8] sm:$0xff]  ;;  %v1225_v4 = vld [vmem:[%s291_s20 + $0x10] sm:$0xff]  ;;  %p695_p8 = scmp.ge.s32.totalorder %s974_s15, 4 }
  0x9b   : > { %v1227_v5 = vld [vmem:[%s291_s20 + $0x18] sm:$0xff]  ;;  %v1229_v6 = vld [vmem:[%s301_s4] sm:$0xff]  ;;  %v1231_v7 = vld [vmem:[%s301_s4 + $0x8] sm:$0xff] }
  0x9c   : > { %v1233_v8 = vld [vmem:[%s301_s4 + $0x10] sm:$0xff]  ;;  %v1235_v9 = vld [vmem:[%s301_s4 + $0x18] sm:$0xff]  ;;  %v1237_v10 = vld [vmem:[%s311_s6] sm:$0xff]  ;;  %397 = sbr.rel (%p695_p8) target bundleno = 189 (0xbd), region = 52 }
  0x9d   : > { %v1239_v11 = vld [vmem:[%s311_s6 + $0x8] sm:$0xff]  ;;  %v1241_v12 = vld [vmem:[%s311_s6 + $0x10] sm:$0xff]  ;;  %v1243_v13 = vld [vmem:[%s311_s6 + $0x18] sm:$0xff] }
  0xa1   : > { %v398_v14 = vsub.f32 %v1221_v2, %v1229_v6  ;;  %v399_v15 = vsub.f32 %v1223_v3, %v1231_v7  ;;  %v400_v16 = vsub.f32 %v1225_v4, %v1233_v8  ;;  %v401_v17 = vsub.f32 %v1227_v5, %v1235_v9  ;;  %v422_v53 = vld [vmem:[#allocation2] sm:$0x3] }
  0xa2   : > { %v402_v18 = vsub.f32 %v1221_v2, %v1237_v10  ;;  %v403_v19 = vsub.f32 %v1223_v3, %v1239_v11  ;;  %v404_v20 = vsub.f32 %v1225_v4, %v1241_v12  ;;  %v405_v21 = vsub.f32 %v1227_v5, %v1243_v13 }
  0xa3   : > { %v406_v22 = vmul.f32 100.0, %v398_v14  ;;  %v407_v23 = vmul.f32 100.0, %v399_v15  ;;  %v408_v24 = vmul.f32 100.0, %v400_v16  ;;  %v409_v25 = vmul.f32 100.0, %v401_v17 }
  0xa4   : > { %v414_v26 = vmul.f32 %v402_v18, %v402_v18  ;;  %v415_v27 = vmul.f32 %v403_v19, %v403_v19  ;;  %v416_v28 = vmul.f32 %v404_v20, %v404_v20  ;;  %v417_v29 = vmul.f32 %v405_v21, %v405_v21 }
  0xa5   : > { %v410_v30 = vmul.f32 %v406_v22, %v398_v14  ;;  %v411_v31 = vmul.f32 %v407_v23, %v399_v15  ;;  %v412_v32 = vmul.f32 %v408_v24, %v400_v16  ;;  %v413_v33 = vmul.f32 %v409_v25, %v401_v17 }
  0xa6   : > { %v444_v52 = vlaneseq  ;;  %vm440_vm1 = vcmask 1040384  }
  0xa7   : > { %v418_v34 = vsub.f32 %v410_v30, %v414_v26  ;;  %v419_v35 = vsub.f32 %v411_v31, %v415_v27  ;;  %v420_v36 = vsub.f32 %v412_v32, %v416_v28  ;;  %v421_v37 = vsub.f32 %v413_v33, %v417_v29 }
  0xa8   : > { %vm446_vm2 = vcmp.lt.s32.totalorder %v444_v52, 256 }
  0xa9   : > { %v423_v38 = vadd.f32 %v420_v36, %v418_v34  ;;  %v430_v39 = vadd.f32 %v421_v37, %v419_v35 }
  0xab   : > { %v424_v40 = vrot.slane %v423_v38, 4  ;;  %v431_v41 = vrot.slane %v430_v39, 4 }
  0xad   : > { %v425_v42 = vadd.f32 %v424_v40, %v423_v38  ;;  %v432_v43 = vadd.f32 %v431_v41, %v430_v39 }
  0xaf   : > { %v426_v44 = vrot.slane %v425_v42, 2  ;;  %v433_v45 = vrot.slane %v432_v43, 2 }
  0xb1   : > { %v427_v46 = vadd.f32 %v426_v44, %v425_v42  ;;  %v434_v47 = vadd.f32 %v433_v45, %v432_v43 }
  0xb3   : > { %v428_v48 = vrot.slane %v427_v46, 1  ;;  %v435_v49 = vrot.slane %v434_v47, 1 }
  0xb5   : > { %v429_v50 = vadd.f32 %v428_v48, %v427_v46  ;;  %v436_v51 = vadd.f32 %v435_v49, %v434_v47 }
  0xb7   : > { %v439_v54 = vrot.slane %v436_v51, 7 }
  0xb9   : > { %v441_v55 = vsel %vm440_vm1, %v429_v50, %v439_v54 }
  0xba   : > { %v443_v56 = vadd.f32 %v441_v55, %v422_v53 }
  0xbc   : > { %448 = vst.msk [vmem:[#allocation2] sm:$0x3] %vm446_vm2, %v443_v56 }
  0xbd PF: > { %p696_p13 = scmp.lt.s32.totalorder %s974_s15, 4 }
  0xbe   : > { %s697_s23 = sshll.u32 (!%p696_p13), %s974_s15, 4 }
  0xbf   : > { %451 = sbr.rel (%p696_p13) target bundleno = 232 (0xe8), region = 56 }
  0xc4   : > { %v460_v57 = vlaneseq  ;;  %v464_v58 = vstv %s697_s23  ;;  %v452_v60 = vsub.f32 %v1221_v2, %v1229_v6  ;;  %v453_v61 = vsub.f32 %v1223_v3, %v1231_v7  ;;  %v493_v45 = vld [vmem:[#allocation2] sm:$0x3] }
  0xc5   : > { %v456_v62 = vsub.f32 %v1221_v2, %v1237_v10  ;;  %v457_v63 = vsub.f32 %v1223_v3, %v1239_v11  ;;  %v454_v14 = vsub.f32 %v1225_v4, %v1233_v8  ;;  %v455_v15 = vsub.f32 %v1227_v5, %v1235_v9 }
  0xc6   : > { %v461_v59 = vshrl.u32 %v460_v57, 7  ;;  %v458_v6 = vsub.f32 %v1225_v4, %v1241_v12  ;;  %v459_v7 = vsub.f32 %v1227_v5, %v1243_v13  ;;  %vm511_vm5 = vcmask 1040384  }
  0xc7   : > { %vm517_vm6 = vcmp.lt.s32.totalorder %v460_v57, 256 }
  0xc8   : > { %v462_v0 = vadd.s32 8, %v461_v59  ;;  %v465_v1 = vadd.s32 %v464_v58, %v461_v59 }
  0xca   : > { %v466_v16 = vadd.s32 %v464_v58, %v462_v0  ;;  %vm467_vm3 = vcmp.lt.s32.totalorder %v465_v1, 72 }
  0xcb   : > { %v469_v2 = vsel %vm467_vm3, %v452_v60, 0.0  ;;  %v470_v10 = vsel %vm467_vm3, %v453_v61, 0.0  ;;  %v473_v17 = vsel %vm467_vm3, %v456_v62, 0.0  ;;  %v474_v3 = vsel %vm467_vm3, %v457_v63, 0.0 }
  0xcc   : > { %vm468_vm4 = vcmp.lt.s32.totalorder %v466_v16, 72  ;;  %v477_v11 = vmul.f32 100.0, %v469_v2  ;;  %v478_v18 = vmul.f32 100.0, %v470_v10  ;;  %v485_v19 = vmul.f32 %v473_v17, %v473_v17 }
  0xcd   : > { %v471_v8 = vsel %vm468_vm4, %v454_v14, 0.0  ;;  %v472_v20 = vsel %vm468_vm4, %v455_v15, 0.0  ;;  %v475_v21 = vsel %vm468_vm4, %v458_v6, 0.0  ;;  %v476_v9 = vsel %vm468_vm4, %v459_v7, 0.0 }
  0xce   : > { %v479_v22 = vmul.f32 100.0, %v471_v8  ;;  %v480_v23 = vmul.f32 100.0, %v472_v20  ;;  %v481_v4 = vmul.f32 %v477_v11, %v469_v2  ;;  %v482_v12 = vmul.f32 %v478_v18, %v470_v10 }
  0xcf   : > { %v486_v24 = vmul.f32 %v474_v3, %v474_v3  ;;  %v487_v5 = vmul.f32 %v475_v21, %v475_v21  ;;  %v488_v13 = vmul.f32 %v476_v9, %v476_v9 }
  0xd0   : > { %v483_v25 = vmul.f32 %v479_v22, %v471_v8  ;;  %v484_v26 = vmul.f32 %v480_v23, %v472_v20  ;;  %v489_v27 = vsub.f32 %v481_v4, %v485_v19 }
  0xd1   : > { %v490_v28 = vsub.f32 %v482_v12, %v486_v24 }
  0xd2   : > { %v491_v29 = vsub.f32 %v483_v25, %v487_v5  ;;  %v492_v30 = vsub.f32 %v484_v26, %v488_v13 }
  0xd4   : > { %v494_v31 = vadd.f32 %v491_v29, %v489_v27  ;;  %v501_v32 = vadd.f32 %v492_v30, %v490_v28 }
  0xd6   : > { %v495_v33 = vrot.slane %v494_v31, 4  ;;  %v502_v34 = vrot.slane %v501_v32, 4 }
  0xd8   : > { %v496_v35 = vadd.f32 %v495_v33, %v494_v31  ;;  %v503_v36 = vadd.f32 %v502_v34, %v501_v32 }
  0xda   : > { %v497_v37 = vrot.slane %v496_v35, 2  ;;  %v504_v38 = vrot.slane %v503_v36, 2 }
  0xdc   : > { %v498_v39 = vadd.f32 %v497_v37, %v496_v35  ;;  %v505_v40 = vadd.f32 %v504_v38, %v503_v36 }
  0xde   : > { %v499_v41 = vrot.slane %v498_v39, 1  ;;  %v506_v42 = vrot.slane %v505_v40, 1 }
  0xe0   : > { %v500_v43 = vadd.f32 %v499_v41, %v498_v39  ;;  %v507_v44 = vadd.f32 %v506_v42, %v505_v40 }
  0xe2   : > { %v510_v46 = vrot.slane %v507_v44, 7 }
  0xe4   : > { %v512_v47 = vsel %vm511_vm5, %v500_v43, %v510_v46 }
  0xe5   : > { %v514_v48 = vadd.f32 %v512_v47, %v493_v45 }
  0xe7   : > { %519 = vst.msk [vmem:[#allocation2] sm:$0x3] %vm517_vm6, %v514_v48 }
  0xe8 PF: > { %p698_p0 = scmp.ne.s32.totalorder %s974_s15, 4 }
  0xea   : > { %523 = sbr.rel (%p698_p0) target bundleno = 425 (0x1a9), region = 60 }
  0xef   : > { %v524_v49 = vld [vmem:[#allocation2] sm:$0x3]  ;;  %vm530_vm7 = vcmask 1040384  }
  0xf0   : > { %v526_v50 = vperm.slane %v524_v49, 0  ;;  %v527_v51 = vperm.slane %v524_v49, 1 }
  0xf2   : > { %v531_v52 = vsel %vm530_vm7, %v526_v50, 0.0  ;;  %v532_v53 = vsel %vm530_vm7, %v527_v51, 0.0 }
  0xf3   : > { %v533_v54 = vadd.f32 %v532_v53, %v531_v52 }
  0xf5   : > { %534 = vadd.xlane.f32.xlu0 %v533_v54 }
 0x168   : > { %v535_v55 = vpop.xlane.xlu0 %534 }
 0x169   : > { %v536_v56 = vrot.slane %v535_v55, 4 }
 0x16b   : > { %v537_v58 = vadd.f32 %v536_v56, %v535_v55 }
 0x16d   : > { %v538_v59 = vrot.slane %v537_v58, 2 }
 0x16f   : > { %v539_v60 = vadd.f32 %v538_v59, %v537_v58 }
 0x171   : > { %v540_v57 = vrot.slane %v539_v60, 1 }
 0x173   : > { %v541_v61 = vadd.f32 %v540_v57, %v539_v60 }
 0x175   : > { %712 = vpush %v541_v61 }
 0x1a6   : > { %s713_s9 = spop %712 }
 0x1a7   : > { %v543_v62 = vstv %s713_s9 }
 0x1a8   : > { %544 = vst [vmem:[#allocation9] sm:$0xff] %v543_v62 }
 0x1a9 PF: > { %p721_p1 = scmp.eq.s32.totalorder %s1046_s19, 4  ;;  %s555_s25 = sshll.u32 %s1306_s3, 4  ;;  %s556_s25 = int_to_ptr.hbm [resolvable:$true] %s555_s25 }
 0x1aa   : > { %s994_s12 = smov [#allocation9]  }
 0x1ab   : > { %s553_s10 = sshll.u32 %s994_s12, 4  ;;  %s554_s10 = int_to_ptr.vmem [resolvable:$true] %s553_s10 }
 0x1ac   : > { %718 = dma.vmem_to_hbm [thread:$0]  (%p721_p1), %s554_s10, 128, %s556_s25, [#allocation5]  }
 0x1ad   : > { %957 = dma.done.wait (%p721_p1), [#allocation5], 128  }
 0x1ae   : > { %959 = vsyncadd (%p721_p1), [#allocation5], 4294967168 }
 0x1af PF: > { %s20_s17 = sadd.s32 1, %s982_s17   ;;  %s1312_s12 = smov %s966_s13 }
 0x1b0   : > { %p17_p2 = scmp.ge.s32.totalorder %s20_s17, 7   ;;  %s1313_s13 = smov %s970_s14 }
 0x1b1   : > { %s1314_s14 = smov %s1071_s26  ;;  %s1315_s15 = smov %s978_s16 }
 0x1b2   : > { %s1316_s16 = smov %s1318_s18  ;;  %19 = sbr.rel (!%p17_p2) target bundleno = 7 (0x7), region = 110 }
 0x1b7   :  { %569 = vsyncpa [#allocation4], 1 }
 0x1b8   :  { %571 = vsyncpa [#allocation4 + $0x1], 1 }
 0x1b9   :  { %572 = vsyncpa [#allocation7], 1 }
 0x1ba   :  { %574 = vsyncpa [#allocation7 + $0x1], 1 }
 0x1bb   :  { %575 = vsyncpa [#allocation5], 1 }
 0x1bc   :  { %577 = vsyncpa [#allocation5 + $0x1], 1 }

</bundles_post_ra>
